<compile_context>
chip_gen: v6e
topology: v6e:2x2x1
jax: 0.10.0
libtpu: 0.0.40
codegen_flags: <defaults>
</compile_context>

<pallas_src>
import functools
import math

import jax
import jax.numpy as jnp
from jax.experimental import pallas as pl
from jax.experimental.pallas import tpu as pltpu

MXU_DTYPE = jnp.bfloat16   # MXU operand dtype (accumulation is always f32)


# ----------------------------- Pallas kernel ------------------------------- #

def _leaky_relu(x, slope=0.01):
    # torch.nn.LeakyReLU default negative_slope = 0.01
    return jnp.where(x > 0, x, slope * x)


def _causal_cnn_kernel(*refs, block_cfgs, kernel_size, seq_len, batch_tile):
    """Whole CausalCNN for `batch_tile` batch elements, fully VMEM-resident.

    refs layout:
      refs[0]              : x   [Bt, C_in0, L]
      per block (in order) : w1 [C_out, K*C_in ] (bf16), b1 [C_out, 1] (f32),
                             w2 [C_out, K*C_out] (bf16), b2 [C_out, 1] (f32),
                             (+ wres [C_out, C_in] bf16, bres [C_out, 1] f32 if proj)
      refs[-1]             : out [Bt, C_out_final, L]
    """
    x_ref, o_ref = refs[0], refs[-1]
    w_refs = refs[1:-1]

    K, L, Bt = kernel_size, seq_len, batch_tile
    BL = Bt * L

    # Lane position within its own sequence; masks the wrap-around of roll so
    # causality never leaks across batch elements. Hoisted: reused by all convs.
    pos = jax.lax.broadcasted_iota(jnp.int32, (1, BL), 1) % L

    # Activations live as a lane-dense [C, Bt*L] f32 slab.
    if Bt == 1:
        h = x_ref[0].astype(jnp.float32)                            # [C_in0, L]
    else:
        x = x_ref[...].astype(jnp.float32)                          # [Bt, C, L]
        h = jnp.transpose(x, (1, 0, 2)).reshape(x.shape[1], BL)

    def causal_conv(inp, w_ref, b_ref, dilation):
        # inp: [C, BL] f32.  One fused MXU dot: [C_out, K*C] x [K*C, BL].
        taps = []
        for j in range(K):                            # static unroll over taps
            s = (K - 1 - j) * dilation                # causal left shift of tap j
            if s == 0:
                taps.append(inp)
            else:
                rolled = pltpu.roll(inp, shift=s, axis=1)           # XLU slot
                taps.append(jnp.where(pos >= s, rolled, 0.0))       # zero the wrap
        stacked = jnp.concatenate(taps, axis=0).astype(MXU_DTYPE)   # one hoisted cast
        y = jnp.dot(w_ref[...], stacked, preferred_element_type=jnp.float32)
        return y + b_ref[...].astype(jnp.float32)     # bias broadcast over lanes

    idx = 0
    for dilation, has_proj, final_relu in block_cfgs:               # static unroll
        w1, b1, w2, b2 = (w_refs[idx], w_refs[idx + 1],
                          w_refs[idx + 2], w_refs[idx + 3])
        idx += 4
        h1 = _leaky_relu(causal_conv(h, w1, b1, dilation))
        # TODO(synk): training-mode Dropout (Bernoulli mask + 1/(1-p)) not applied;
        #             inference semantics (identity) only.
        h2 = _leaky_relu(causal_conv(h1, w2, b2, dilation))
        if has_proj:
            wres, bres = w_refs[idx], w_refs[idx + 1]
            idx += 2
            res = (jnp.dot(wres[...], h.astype(MXU_DTYPE),
                           preferred_element_type=jnp.float32)
                   + bres[...].astype(jnp.float32))
        else:
            res = h
        h = h2 + res
        if final_relu:
            h = _leaky_relu(h)

    c_out_f = h.shape[0]
    if Bt == 1:
        o_ref[0] = h.astype(o_ref.dtype)
    else:
        o_ref[...] = jnp.transpose(h.reshape(c_out_f, Bt, L),
                                   (1, 0, 2)).astype(o_ref.dtype)


def causal_cnn_forward(x, blocks, *, kernel_size, batch_tile=None):
    """x: [B, C_in, L] -> [B, C_out, L]; whole network in ONE pallas_call."""
    B, c_in, L = x.shape

    if batch_tile is None:
        # Keep >= 2 grid steps when possible so both v7x TensorCores get work.
        batch_tile = max(1, B // 2)
        while B % batch_tile:
            batch_tile -= 1
    assert B % batch_tile == 0

    operands = [x]
    in_specs = [pl.BlockSpec((batch_tile, c_in, L), lambda b: (b, 0, 0))]
    block_cfgs = []
    c_out = c_in
    for blk in blocks:
        p = blk["params"]
        c_out = p["w1"].shape[0]
        has_proj = "wres" in p
        names = ["w1", "b1", "w2", "b2"] + (["wres", "bres"] if has_proj else [])
        for name in names:
            arr = p[name]
            operands.append(arr)
            # Grid-invariant spec: weights stay VMEM-resident across all steps.
            in_specs.append(pl.BlockSpec(arr.shape, lambda b: (0, 0)))
        block_cfgs.append((blk["dilation"], has_proj, blk["final_relu"]))

    kernel = functools.partial(
        _causal_cnn_kernel,
        block_cfgs=tuple(block_cfgs),
        kernel_size=kernel_size,
        seq_len=L,
        batch_tile=batch_tile)

    return pl.pallas_call(
        kernel,
        out_shape=jax.ShapeDtypeStruct((B, c_out, L), x.dtype),
        grid=(B // batch_tile,),
        in_specs=in_specs,
        out_specs=pl.BlockSpec((batch_tile, c_out, L), lambda b: (b, 0, 0)),
        compiler_params=pltpu.CompilerParams(
            dimension_semantics=("parallel",),      # shard batch over v7x's 2 TCs
            vmem_limit_bytes=32 * 1024 * 1024,
        ),
    )(*operands)


# --------------------------- Parameter construction ------------------------ #

def _weight_norm_effective(v, g):
    # PyTorch weight_norm (dim=0): w = g * v / ||v||, norm over all dims except 0.
    norm = jnp.sqrt(jnp.sum(v * v, axis=(1, 2), keepdims=True))
    return g * v / norm


def _init_conv(key, c_out, c_in, k):
    kv, kb = jax.random.split(key)
    bound = 1.0 / math.sqrt(c_in * k)
    v = jax.random.uniform(kv, (c_out, c_in, k), jnp.float32, -bound, bound)
    g = jnp.sqrt(jnp.sum(v * v, axis=(1, 2), keepdims=True))   # PyTorch init: g = ||v||
    w = _weight_norm_effective(v, g)                            # [C_out, C_in, K]
    # Dense tap-major 2-D layout [C_out, K*C_in]: column block j holds W[:, :, j].
    w2d = jnp.transpose(w, (0, 2, 1)).reshape(c_out, k * c_in).astype(MXU_DTYPE)
    b = jax.random.uniform(kb, (c_out, 1), jnp.float32, -bound, bound)
    return w2d, b


def make_causal_cnn_params(key, in_channels, channels, depth, out_channels, kernel_size):
    blocks = []
    dilation = 1
    for i in range(depth + 1):
        last = (i == depth)
        c_in = in_channels if i == 0 else channels
        c_out = out_channels if last else channels
        key, k1, k2, k3 = jax.random.split(key, 4)
        w1, b1 = _init_conv(k1, c_out, c_in, kernel_size)
        w2, b2 = _init_conv(k2, c_out, c_out, kernel_size)
        params = {"w1": w1, "b1": b1, "w2": w2, "b2": b2}
        if c_in != c_out:                                       # 1x1 residual projection
            kw, kb = jax.random.split(k3)
            bound = 1.0 / math.sqrt(c_in)
            params["wres"] = jax.random.uniform(
                kw, (c_out, c_in), jnp.float32, -bound, bound).astype(MXU_DTYPE)
            params["bres"] = jax.random.uniform(kb, (c_out, 1), jnp.float32, -bound, bound)
        blocks.append({"params": params, "dilation": dilation,
                       "kernel_size": kernel_size, "final_relu": False})
        dilation *= 2
    return blocks


# ------------------------------ Pure-JAX reference ------------------------- #
# Mirrors the module math with the same operand dtypes (bf16 MXU operands, f32
# accumulation) but via an independent pad + slice + einsum path.

def _ref_conv(h, w2d, b, dilation, k):
    _, c, seq = h.shape
    pad = (k - 1) * dilation
    hp = jnp.pad(h, ((0, 0), (0, 0), (pad, 0)))
    windows = [hp[:, :, j * dilation: j * dilation + seq] for j in range(k)]
    stacked = jnp.concatenate(windows, axis=1).astype(w2d.dtype)   # [B, K*C, L]
    y = jnp.einsum("ok,bkl->bol", w2d, stacked,
                   preferred_element_type=jnp.float32)
    return y + b[None]


def _ref_block(x, p, dilation, k, final_relu):
    h = _leaky_relu(_ref_conv(x, p["w1"], p["b1"], dilation, k))
    h = _leaky_relu(_ref_conv(h, p["w2"], p["b2"], dilation, k))
    if "wres" in p:
        res = jnp.einsum("oc,bcl->bol", p["wres"], x.astype(p["wres"].dtype),
                         preferred_element_type=jnp.float32) + p["bres"][None]
    else:
        res = x
    out = h + res
    return _leaky_relu(out) if final_relu else out


# ----------------------------------- Test ---------------------------------- #

if __name__ == "__main__":
    # Small shapes consistent with the module's forward: x is (B, C, L).
    B, L = 2, 128
    in_channels, channels, depth, out_channels, kernel_size = 4, 8, 2, 16, 3
    # dropout = 0.0 (inference semantics)

    key = jax.random.PRNGKey(0)
    key, xk = jax.random.split(key)
    x = jax.random.normal(xk, (B, in_channels, L), dtype=jnp.float32)

    blocks = make_causal_cnn_params(key, in_channels, channels, depth,
                                    out_channels, kernel_size)

    out = causal_cnn_forward(x, blocks, kernel_size=kernel_size)
    out = jax.block_until_ready(out)

    ref = x
    for blk in blocks:
        ref = _ref_block(ref, blk["params"], blk["dilation"],
                         blk["kernel_size"], blk["final_relu"])

    assert out.shape == (B, out_channels, L)
    max_err = float(jnp.max(jnp.abs(out - ref)))
    assert jnp.allclose(out, ref, atol=2e-3, rtol=2e-3), max_err

    print("KERNEL_OK")
</pallas_src>

<mosaic_0001>
module attributes {stable_mosaic.version = 11 : i64} {
  func.func @_causal_cnn_kernel(%arg0: i32, %arg1: memref<1x4x128xf32, #tpu.memory_space<vmem>>, %arg2: memref<8x12xbf16, #tpu.memory_space<vmem>>, %arg3: memref<8x1xf32, #tpu.memory_space<vmem>>, %arg4: memref<8x24xbf16, #tpu.memory_space<vmem>>, %arg5: memref<8x1xf32, #tpu.memory_space<vmem>>, %arg6: memref<8x4xbf16, #tpu.memory_space<vmem>>, %arg7: memref<8x1xf32, #tpu.memory_space<vmem>>, %arg8: memref<8x24xbf16, #tpu.memory_space<vmem>>, %arg9: memref<8x1xf32, #tpu.memory_space<vmem>>, %arg10: memref<8x24xbf16, #tpu.memory_space<vmem>>, %arg11: memref<8x1xf32, #tpu.memory_space<vmem>>, %arg12: memref<16x24xbf16, #tpu.memory_space<vmem>>, %arg13: memref<16x1xf32, #tpu.memory_space<vmem>>, %arg14: memref<16x48xbf16, #tpu.memory_space<vmem>>, %arg15: memref<16x1xf32, #tpu.memory_space<vmem>>, %arg16: memref<16x8xbf16, #tpu.memory_space<vmem>>, %arg17: memref<16x1xf32, #tpu.memory_space<vmem>>, %arg18: memref<1x16x128xf32, #tpu.memory_space<vmem>>) attributes {dimension_semantics = [#tpu.dimension_semantics<parallel>], iteration_bounds = array<i64: 2>, scalar_prefetch = 0 : i64, scratch_operands = 0 : i64, tpu.core_type = #tpu.core_type<tc>, window_params = [{transform_indices = @transform_0, window_bounds = array<i64: 1, 4, 128>}, {pipeline_mode = #tpu.pipeline_mode<synchronous>, transform_indices = @transform_1, window_bounds = array<i64: 8, 12>}, {pipeline_mode = #tpu.pipeline_mode<synchronous>, transform_indices = @transform_2, window_bounds = array<i64: 8, 1>}, {pipeline_mode = #tpu.pipeline_mode<synchronous>, transform_indices = @transform_3, window_bounds = array<i64: 8, 24>}, {pipeline_mode = #tpu.pipeline_mode<synchronous>, transform_indices = @transform_4, window_bounds = array<i64: 8, 1>}, {pipeline_mode = #tpu.pipeline_mode<synchronous>, transform_indices = @transform_5, window_bounds = array<i64: 8, 4>}, {pipeline_mode = #tpu.pipeline_mode<synchronous>, transform_indices = @transform_6, window_bounds = array<i64: 8, 1>}, {pipeline_mode = #tpu.pipeline_mode<synchronous>, transform_indices = @transform_7, window_bounds = array<i64: 8, 24>}, {pipeline_mode = #tpu.pipeline_mode<synchronous>, transform_indices = @transform_8, window_bounds = array<i64: 8, 1>}, {pipeline_mode = #tpu.pipeline_mode<synchronous>, transform_indices = @transform_9, window_bounds = array<i64: 8, 24>}, {pipeline_mode = #tpu.pipeline_mode<synchronous>, transform_indices = @transform_10, window_bounds = array<i64: 8, 1>}, {pipeline_mode = #tpu.pipeline_mode<synchronous>, transform_indices = @transform_11, window_bounds = array<i64: 16, 24>}, {pipeline_mode = #tpu.pipeline_mode<synchronous>, transform_indices = @transform_12, window_bounds = array<i64: 16, 1>}, {pipeline_mode = #tpu.pipeline_mode<synchronous>, transform_indices = @transform_13, window_bounds = array<i64: 16, 48>}, {pipeline_mode = #tpu.pipeline_mode<synchronous>, transform_indices = @transform_14, window_bounds = array<i64: 16, 1>}, {pipeline_mode = #tpu.pipeline_mode<synchronous>, transform_indices = @transform_15, window_bounds = array<i64: 16, 8>}, {pipeline_mode = #tpu.pipeline_mode<synchronous>, transform_indices = @transform_16, window_bounds = array<i64: 16, 1>}, {transform_indices = @transform_17, window_bounds = array<i64: 1, 16, 128>}]} {
    %0 = tpu.iota {dimensions = array<i32: 1>} : vector<1x128xi32>
    %c128_i32 = arith.constant 128 : i32
    %c0_i32 = arith.constant 0 : i32
    %1 = arith.cmpi eq, %c128_i32, %c0_i32 : i32
    %c1_i32 = arith.constant 1 : i32
    %2 = arith.select %1, %c1_i32, %c128_i32 : i32
    %3 = vector.broadcast %2 : i32 to vector<1x128xi32>
    %4 = arith.remsi %0, %3 : vector<1x128xi32>
    %c0_i32_0 = arith.constant 0 : i32
    %5 = vector.broadcast %c0_i32_0 : i32 to vector<1x128xi32>
    %6 = arith.cmpi ne, %4, %5 : vector<1x128xi32>
    %c0_i32_1 = arith.constant 0 : i32
    %7 = vector.broadcast %c0_i32_1 : i32 to vector<1x128xi32>
    %8 = arith.cmpi slt, %4, %7 : vector<1x128xi32>
    %c0_i32_2 = arith.constant 0 : i32
    %9 = arith.cmpi slt, %2, %c0_i32_2 : i32
    %10 = vector.broadcast %9 : i1 to vector<1x128xi1>
    %11 = vector.broadcast %10 : vector<1x128xi1> to vector<1x128xi1>
    %12 = arith.xori %8, %11 : vector<1x128xi1>
    %13 = arith.andi %12, %6 : vector<1x128xi1>
    %14 = vector.broadcast %2 : i32 to vector<1x128xi32>
    %15 = arith.addi %4, %14 : vector<1x128xi32>
    %16 = arith.select %13, %15, %4 : vector<1x128xi1>, vector<1x128xi32>
    %c0 = arith.constant 0 : index
    %c0_3 = arith.constant 0 : index
    %c0_4 = arith.constant 0 : index
    %17 = vector.load %arg1[%c0, %c0_3, %c0_4] : memref<1x4x128xf32, #tpu.memory_space<vmem>>, vector<1x4x128xf32>
    %18 = vector.shape_cast %17 : vector<1x4x128xf32> to vector<4x128xf32>
    %c2_i32 = arith.constant 2 : i32
    %19 = tpu.dynamic_rotate %18 by %c2_i32 dim 1 : vector<4x128xf32>, i32 -> vector<4x128xf32>
    %c2_i32_5 = arith.constant 2 : i32
    %20 = vector.broadcast %c2_i32_5 : i32 to vector<1x128xi32>
    %21 = arith.cmpi sge, %16, %20 : vector<1x128xi32>
    %cst = arith.constant 0.000000e+00 : f32
    %22 = vector.shape_cast %21 : vector<1x128xi1> to vector<1x128xi1>
    %23 = vector.broadcast %22 : vector<1x128xi1> to vector<4x128xi1>
    %24 = vector.broadcast %cst : f32 to vector<4x128xf32>
    %25 = arith.select %23, %19, %24 : vector<4x128xi1>, vector<4x128xf32>
    %c1_i32_6 = arith.constant 1 : i32
    %26 = tpu.dynamic_rotate %18 by %c1_i32_6 dim 1 : vector<4x128xf32>, i32 -> vector<4x128xf32>
    %c1_i32_7 = arith.constant 1 : i32
    %27 = vector.broadcast %c1_i32_7 : i32 to vector<1x128xi32>
    %28 = arith.cmpi sge, %16, %27 : vector<1x128xi32>
    %cst_8 = arith.constant 0.000000e+00 : f32
    %29 = vector.shape_cast %28 : vector<1x128xi1> to vector<1x128xi1>
    %30 = vector.broadcast %29 : vector<1x128xi1> to vector<4x128xi1>
    %31 = vector.broadcast %cst_8 : f32 to vector<4x128xf32>
    %32 = arith.select %30, %26, %31 : vector<4x128xi1>, vector<4x128xf32>
    %33 = tpu.concatenate %25, %32, %18 in 0 : vector<4x128xf32>, vector<4x128xf32>, vector<4x128xf32> -> vector<12x128xf32>
    %34 = arith.truncf %33 : vector<12x128xf32> to vector<12x128xbf16>
    %c0_9 = arith.constant 0 : index
    %c0_10 = arith.constant 0 : index
    %35 = vector.load %arg2[%c0_9, %c0_10] : memref<8x12xbf16, #tpu.memory_space<vmem>>, vector<8x12xbf16>
    %cst_11 = arith.constant dense<0.000000e+00> : vector<8x128xf32>
    %36 = tpu.matmul %35, %34, %cst_11 {dimension_numbers = #tpu.dot_dimension_numbers<[1], [0], [0], [1], [0, 0, 1, 1], [], []>} : vector<8x12xbf16>, vector<12x128xbf16>, vector<8x128xf32> -> vector<8x128xf32>
    %c0_12 = arith.constant 0 : index
    %c0_13 = arith.constant 0 : index
    %37 = vector.load %arg3[%c0_12, %c0_13] : memref<8x1xf32, #tpu.memory_space<vmem>>, vector<8x1xf32>
    %38 = vector.broadcast %37 : vector<8x1xf32> to vector<8x128xf32>
    %39 = arith.addf %36, %38 : vector<8x128xf32>
    %cst_14 = arith.constant 0.000000e+00 : f32
    %40 = vector.broadcast %cst_14 : f32 to vector<8x128xf32>
    %41 = arith.cmpf ogt, %39, %40 : vector<8x128xf32>
    %cst_15 = arith.constant 0.00999999977 : f32
    %42 = vector.broadcast %cst_15 : f32 to vector<8x128xf32>
    %43 = arith.mulf %42, %39 : vector<8x128xf32>
    %44 = arith.select %41, %39, %43 : vector<8x128xi1>, vector<8x128xf32>
    %c2_i32_16 = arith.constant 2 : i32
    %45 = tpu.dynamic_rotate %44 by %c2_i32_16 dim 1 : vector<8x128xf32>, i32 -> vector<8x128xf32>
    %c2_i32_17 = arith.constant 2 : i32
    %46 = vector.broadcast %c2_i32_17 : i32 to vector<1x128xi32>
    %47 = arith.cmpi sge, %16, %46 : vector<1x128xi32>
    %cst_18 = arith.constant 0.000000e+00 : f32
    %48 = vector.shape_cast %47 : vector<1x128xi1> to vector<1x128xi1>
    %49 = vector.broadcast %48 : vector<1x128xi1> to vector<8x128xi1>
    %50 = vector.broadcast %cst_18 : f32 to vector<8x128xf32>
    %51 = arith.select %49, %45, %50 : vector<8x128xi1>, vector<8x128xf32>
    %c1_i32_19 = arith.constant 1 : i32
    %52 = tpu.dynamic_rotate %44 by %c1_i32_19 dim 1 : vector<8x128xf32>, i32 -> vector<8x128xf32>
    %c1_i32_20 = arith.constant 1 : i32
    %53 = vector.broadcast %c1_i32_20 : i32 to vector<1x128xi32>
    %54 = arith.cmpi sge, %16, %53 : vector<1x128xi32>
    %cst_21 = arith.constant 0.000000e+00 : f32
    %55 = vector.shape_cast %54 : vector<1x128xi1> to vector<1x128xi1>
    %56 = vector.broadcast %55 : vector<1x128xi1> to vector<8x128xi1>
    %57 = vector.broadcast %cst_21 : f32 to vector<8x128xf32>
    %58 = arith.select %56, %52, %57 : vector<8x128xi1>, vector<8x128xf32>
    %59 = tpu.concatenate %51, %58, %44 in 0 : vector<8x128xf32>, vector<8x128xf32>, vector<8x128xf32> -> vector<24x128xf32>
    %60 = arith.truncf %59 : vector<24x128xf32> to vector<24x128xbf16>
    %c0_22 = arith.constant 0 : index
    %c0_23 = arith.constant 0 : index
    %61 = vector.load %arg4[%c0_22, %c0_23] : memref<8x24xbf16, #tpu.memory_space<vmem>>, vector<8x24xbf16>
    %cst_24 = arith.constant dense<0.000000e+00> : vector<8x128xf32>
    %62 = tpu.matmul %61, %60, %cst_24 {dimension_numbers = #tpu.dot_dimension_numbers<[1], [0], [0], [1], [0, 0, 1, 1], [], []>} : vector<8x24xbf16>, vector<24x128xbf16>, vector<8x128xf32> -> vector<8x128xf32>
    %c0_25 = arith.constant 0 : index
    %c0_26 = arith.constant 0 : index
    %63 = vector.load %arg5[%c0_25, %c0_26] : memref<8x1xf32, #tpu.memory_space<vmem>>, vector<8x1xf32>
    %64 = vector.broadcast %63 : vector<8x1xf32> to vector<8x128xf32>
    %65 = arith.addf %62, %64 : vector<8x128xf32>
    %cst_27 = arith.constant 0.000000e+00 : f32
    %66 = vector.broadcast %cst_27 : f32 to vector<8x128xf32>
    %67 = arith.cmpf ogt, %65, %66 : vector<8x128xf32>
    %cst_28 = arith.constant 0.00999999977 : f32
    %68 = vector.broadcast %cst_28 : f32 to vector<8x128xf32>
    %69 = arith.mulf %68, %65 : vector<8x128xf32>
    %70 = arith.select %67, %65, %69 : vector<8x128xi1>, vector<8x128xf32>
    %c0_29 = arith.constant 0 : index
    %c0_30 = arith.constant 0 : index
    %71 = vector.load %arg6[%c0_29, %c0_30] : memref<8x4xbf16, #tpu.memory_space<vmem>>, vector<8x4xbf16>
    %72 = arith.truncf %18 : vector<4x128xf32> to vector<4x128xbf16>
    %cst_31 = arith.constant dense<0.000000e+00> : vector<8x128xf32>
    %73 = tpu.matmul %71, %72, %cst_31 {dimension_numbers = #tpu.dot_dimension_numbers<[1], [0], [0], [1], [0, 0, 1, 1], [], []>} : vector<8x4xbf16>, vector<4x128xbf16>, vector<8x128xf32> -> vector<8x128xf32>
    %c0_32 = arith.constant 0 : index
    %c0_33 = arith.constant 0 : index
    %74 = vector.load %arg7[%c0_32, %c0_33] : memref<8x1xf32, #tpu.memory_space<vmem>>, vector<8x1xf32>
    %75 = vector.broadcast %74 : vector<8x1xf32> to vector<8x128xf32>
    %76 = arith.addf %73, %75 : vector<8x128xf32>
    %77 = arith.addf %70, %76 : vector<8x128xf32>
    %c4_i32 = arith.constant 4 : i32
    %78 = tpu.dynamic_rotate %77 by %c4_i32 dim 1 : vector<8x128xf32>, i32 -> vector<8x128xf32>
    %c4_i32_34 = arith.constant 4 : i32
    %79 = vector.broadcast %c4_i32_34 : i32 to vector<1x128xi32>
    %80 = arith.cmpi sge, %16, %79 : vector<1x128xi32>
    %cst_35 = arith.constant 0.000000e+00 : f32
    %81 = vector.shape_cast %80 : vector<1x128xi1> to vector<1x128xi1>
    %82 = vector.broadcast %81 : vector<1x128xi1> to vector<8x128xi1>
    %83 = vector.broadcast %cst_35 : f32 to vector<8x128xf32>
    %84 = arith.select %82, %78, %83 : vector<8x128xi1>, vector<8x128xf32>
    %c2_i32_36 = arith.constant 2 : i32
    %85 = tpu.dynamic_rotate %77 by %c2_i32_36 dim 1 : vector<8x128xf32>, i32 -> vector<8x128xf32>
    %c2_i32_37 = arith.constant 2 : i32
    %86 = vector.broadcast %c2_i32_37 : i32 to vector<1x128xi32>
    %87 = arith.cmpi sge, %16, %86 : vector<1x128xi32>
    %cst_38 = arith.constant 0.000000e+00 : f32
    %88 = vector.shape_cast %87 : vector<1x128xi1> to vector<1x128xi1>
    %89 = vector.broadcast %88 : vector<1x128xi1> to vector<8x128xi1>
    %90 = vector.broadcast %cst_38 : f32 to vector<8x128xf32>
    %91 = arith.select %89, %85, %90 : vector<8x128xi1>, vector<8x128xf32>
    %92 = tpu.concatenate %84, %91, %77 in 0 : vector<8x128xf32>, vector<8x128xf32>, vector<8x128xf32> -> vector<24x128xf32>
    %93 = arith.truncf %92 : vector<24x128xf32> to vector<24x128xbf16>
    %c0_39 = arith.constant 0 : index
    %c0_40 = arith.constant 0 : index
    %94 = vector.load %arg8[%c0_39, %c0_40] : memref<8x24xbf16, #tpu.memory_space<vmem>>, vector<8x24xbf16>
    %cst_41 = arith.constant dense<0.000000e+00> : vector<8x128xf32>
    %95 = tpu.matmul %94, %93, %cst_41 {dimension_numbers = #tpu.dot_dimension_numbers<[1], [0], [0], [1], [0, 0, 1, 1], [], []>} : vector<8x24xbf16>, vector<24x128xbf16>, vector<8x128xf32> -> vector<8x128xf32>
    %c0_42 = arith.constant 0 : index
    %c0_43 = arith.constant 0 : index
    %96 = vector.load %arg9[%c0_42, %c0_43] : memref<8x1xf32, #tpu.memory_space<vmem>>, vector<8x1xf32>
    %97 = vector.broadcast %96 : vector<8x1xf32> to vector<8x128xf32>
    %98 = arith.addf %95, %97 : vector<8x128xf32>
    %cst_44 = arith.constant 0.000000e+00 : f32
    %99 = vector.broadcast %cst_44 : f32 to vector<8x128xf32>
    %100 = arith.cmpf ogt, %98, %99 : vector<8x128xf32>
    %cst_45 = arith.constant 0.00999999977 : f32
    %101 = vector.broadcast %cst_45 : f32 to vector<8x128xf32>
    %102 = arith.mulf %101, %98 : vector<8x128xf32>
    %103 = arith.select %100, %98, %102 : vector<8x128xi1>, vector<8x128xf32>
    %c4_i32_46 = arith.constant 4 : i32
    %104 = tpu.dynamic_rotate %103 by %c4_i32_46 dim 1 : vector<8x128xf32>, i32 -> vector<8x128xf32>
    %c4_i32_47 = arith.constant 4 : i32
    %105 = vector.broadcast %c4_i32_47 : i32 to vector<1x128xi32>
    %106 = arith.cmpi sge, %16, %105 : vector<1x128xi32>
    %cst_48 = arith.constant 0.000000e+00 : f32
    %107 = vector.shape_cast %106 : vector<1x128xi1> to vector<1x128xi1>
    %108 = vector.broadcast %107 : vector<1x128xi1> to vector<8x128xi1>
    %109 = vector.broadcast %cst_48 : f32 to vector<8x128xf32>
    %110 = arith.select %108, %104, %109 : vector<8x128xi1>, vector<8x128xf32>
    %c2_i32_49 = arith.constant 2 : i32
    %111 = tpu.dynamic_rotate %103 by %c2_i32_49 dim 1 : vector<8x128xf32>, i32 -> vector<8x128xf32>
    %c2_i32_50 = arith.constant 2 : i32
    %112 = vector.broadcast %c2_i32_50 : i32 to vector<1x128xi32>
    %113 = arith.cmpi sge, %16, %112 : vector<1x128xi32>
    %cst_51 = arith.constant 0.000000e+00 : f32
    %114 = vector.shape_cast %113 : vector<1x128xi1> to vector<1x128xi1>
    %115 = vector.broadcast %114 : vector<1x128xi1> to vector<8x128xi1>
    %116 = vector.broadcast %cst_51 : f32 to vector<8x128xf32>
    %117 = arith.select %115, %111, %116 : vector<8x128xi1>, vector<8x128xf32>
    %118 = tpu.concatenate %110, %117, %103 in 0 : vector<8x128xf32>, vector<8x128xf32>, vector<8x128xf32> -> vector<24x128xf32>
    %119 = arith.truncf %118 : vector<24x128xf32> to vector<24x128xbf16>
    %c0_52 = arith.constant 0 : index
    %c0_53 = arith.constant 0 : index
    %120 = vector.load %arg10[%c0_52, %c0_53] : memref<8x24xbf16, #tpu.memory_space<vmem>>, vector<8x24xbf16>
    %cst_54 = arith.constant dense<0.000000e+00> : vector<8x128xf32>
    %121 = tpu.matmul %120, %119, %cst_54 {dimension_numbers = #tpu.dot_dimension_numbers<[1], [0], [0], [1], [0, 0, 1, 1], [], []>} : vector<8x24xbf16>, vector<24x128xbf16>, vector<8x128xf32> -> vector<8x128xf32>
    %c0_55 = arith.constant 0 : index
    %c0_56 = arith.constant 0 : index
    %122 = vector.load %arg11[%c0_55, %c0_56] : memref<8x1xf32, #tpu.memory_space<vmem>>, vector<8x1xf32>
    %123 = vector.broadcast %122 : vector<8x1xf32> to vector<8x128xf32>
    %124 = arith.addf %121, %123 : vector<8x128xf32>
    %cst_57 = arith.constant 0.000000e+00 : f32
    %125 = vector.broadcast %cst_57 : f32 to vector<8x128xf32>
    %126 = arith.cmpf ogt, %124, %125 : vector<8x128xf32>
    %cst_58 = arith.constant 0.00999999977 : f32
    %127 = vector.broadcast %cst_58 : f32 to vector<8x128xf32>
    %128 = arith.mulf %127, %124 : vector<8x128xf32>
    %129 = arith.select %126, %124, %128 : vector<8x128xi1>, vector<8x128xf32>
    %130 = arith.addf %129, %77 : vector<8x128xf32>
    %c8_i32 = arith.constant 8 : i32
    %131 = tpu.dynamic_rotate %130 by %c8_i32 dim 1 : vector<8x128xf32>, i32 -> vector<8x128xf32>
    %c8_i32_59 = arith.constant 8 : i32
    %132 = vector.broadcast %c8_i32_59 : i32 to vector<1x128xi32>
    %133 = arith.cmpi sge, %16, %132 : vector<1x128xi32>
    %cst_60 = arith.constant 0.000000e+00 : f32
    %134 = vector.shape_cast %133 : vector<1x128xi1> to vector<1x128xi1>
    %135 = vector.broadcast %134 : vector<1x128xi1> to vector<8x128xi1>
    %136 = vector.broadcast %cst_60 : f32 to vector<8x128xf32>
    %137 = arith.select %135, %131, %136 : vector<8x128xi1>, vector<8x128xf32>
    %c4_i32_61 = arith.constant 4 : i32
    %138 = tpu.dynamic_rotate %130 by %c4_i32_61 dim 1 : vector<8x128xf32>, i32 -> vector<8x128xf32>
    %c4_i32_62 = arith.constant 4 : i32
    %139 = vector.broadcast %c4_i32_62 : i32 to vector<1x128xi32>
    %140 = arith.cmpi sge, %16, %139 : vector<1x128xi32>
    %cst_63 = arith.constant 0.000000e+00 : f32
    %141 = vector.shape_cast %140 : vector<1x128xi1> to vector<1x128xi1>
    %142 = vector.broadcast %141 : vector<1x128xi1> to vector<8x128xi1>
    %143 = vector.broadcast %cst_63 : f32 to vector<8x128xf32>
    %144 = arith.select %142, %138, %143 : vector<8x128xi1>, vector<8x128xf32>
    %145 = tpu.concatenate %137, %144, %130 in 0 : vector<8x128xf32>, vector<8x128xf32>, vector<8x128xf32> -> vector<24x128xf32>
    %146 = arith.truncf %145 : vector<24x128xf32> to vector<24x128xbf16>
    %c0_64 = arith.constant 0 : index
    %c0_65 = arith.constant 0 : index
    %147 = vector.load %arg12[%c0_64, %c0_65] : memref<16x24xbf16, #tpu.memory_space<vmem>>, vector<16x24xbf16>
    %cst_66 = arith.constant dense<0.000000e+00> : vector<16x128xf32>
    %148 = tpu.matmul %147, %146, %cst_66 {dimension_numbers = #tpu.dot_dimension_numbers<[1], [0], [0], [1], [0, 0, 1, 1], [], []>} : vector<16x24xbf16>, vector<24x128xbf16>, vector<16x128xf32> -> vector<16x128xf32>
    %c0_67 = arith.constant 0 : index
    %c0_68 = arith.constant 0 : index
    %149 = vector.load %arg13[%c0_67, %c0_68] : memref<16x1xf32, #tpu.memory_space<vmem>>, vector<16x1xf32>
    %150 = vector.broadcast %149 : vector<16x1xf32> to vector<16x128xf32>
    %151 = arith.addf %148, %150 : vector<16x128xf32>
    %cst_69 = arith.constant 0.000000e+00 : f32
    %152 = vector.broadcast %cst_69 : f32 to vector<16x128xf32>
    %153 = arith.cmpf ogt, %151, %152 : vector<16x128xf32>
    %cst_70 = arith.constant 0.00999999977 : f32
    %154 = vector.broadcast %cst_70 : f32 to vector<16x128xf32>
    %155 = arith.mulf %154, %151 : vector<16x128xf32>
    %156 = arith.select %153, %151, %155 : vector<16x128xi1>, vector<16x128xf32>
    %c8_i32_71 = arith.constant 8 : i32
    %157 = tpu.dynamic_rotate %156 by %c8_i32_71 dim 1 : vector<16x128xf32>, i32 -> vector<16x128xf32>
    %c8_i32_72 = arith.constant 8 : i32
    %158 = vector.broadcast %c8_i32_72 : i32 to vector<1x128xi32>
    %159 = arith.cmpi sge, %16, %158 : vector<1x128xi32>
    %cst_73 = arith.constant 0.000000e+00 : f32
    %160 = vector.shape_cast %159 : vector<1x128xi1> to vector<1x128xi1>
    %161 = vector.broadcast %160 : vector<1x128xi1> to vector<16x128xi1>
    %162 = vector.broadcast %cst_73 : f32 to vector<16x128xf32>
    %163 = arith.select %161, %157, %162 : vector<16x128xi1>, vector<16x128xf32>
    %c4_i32_74 = arith.constant 4 : i32
    %164 = tpu.dynamic_rotate %156 by %c4_i32_74 dim 1 : vector<16x128xf32>, i32 -> vector<16x128xf32>
    %c4_i32_75 = arith.constant 4 : i32
    %165 = vector.broadcast %c4_i32_75 : i32 to vector<1x128xi32>
    %166 = arith.cmpi sge, %16, %165 : vector<1x128xi32>
    %cst_76 = arith.constant 0.000000e+00 : f32
    %167 = vector.shape_cast %166 : vector<1x128xi1> to vector<1x128xi1>
    %168 = vector.broadcast %167 : vector<1x128xi1> to vector<16x128xi1>
    %169 = vector.broadcast %cst_76 : f32 to vector<16x128xf32>
    %170 = arith.select %168, %164, %169 : vector<16x128xi1>, vector<16x128xf32>
    %171 = tpu.concatenate %163, %170, %156 in 0 : vector<16x128xf32>, vector<16x128xf32>, vector<16x128xf32> -> vector<48x128xf32>
    %172 = arith.truncf %171 : vector<48x128xf32> to vector<48x128xbf16>
    %c0_77 = arith.constant 0 : index
    %c0_78 = arith.constant 0 : index
    %173 = vector.load %arg14[%c0_77, %c0_78] : memref<16x48xbf16, #tpu.memory_space<vmem>>, vector<16x48xbf16>
    %cst_79 = arith.constant dense<0.000000e+00> : vector<16x128xf32>
    %174 = tpu.matmul %173, %172, %cst_79 {dimension_numbers = #tpu.dot_dimension_numbers<[1], [0], [0], [1], [0, 0, 1, 1], [], []>} : vector<16x48xbf16>, vector<48x128xbf16>, vector<16x128xf32> -> vector<16x128xf32>
    %c0_80 = arith.constant 0 : index
    %c0_81 = arith.constant 0 : index
    %175 = vector.load %arg15[%c0_80, %c0_81] : memref<16x1xf32, #tpu.memory_space<vmem>>, vector<16x1xf32>
    %176 = vector.broadcast %175 : vector<16x1xf32> to vector<16x128xf32>
    %177 = arith.addf %174, %176 : vector<16x128xf32>
    %cst_82 = arith.constant 0.000000e+00 : f32
    %178 = vector.broadcast %cst_82 : f32 to vector<16x128xf32>
    %179 = arith.cmpf ogt, %177, %178 : vector<16x128xf32>
    %cst_83 = arith.constant 0.00999999977 : f32
    %180 = vector.broadcast %cst_83 : f32 to vector<16x128xf32>
    %181 = arith.mulf %180, %177 : vector<16x128xf32>
    %182 = arith.select %179, %177, %181 : vector<16x128xi1>, vector<16x128xf32>
    %c0_84 = arith.constant 0 : index
    %c0_85 = arith.constant 0 : index
    %183 = vector.load %arg16[%c0_84, %c0_85] : memref<16x8xbf16, #tpu.memory_space<vmem>>, vector<16x8xbf16>
    %184 = arith.truncf %130 : vector<8x128xf32> to vector<8x128xbf16>
    %cst_86 = arith.constant dense<0.000000e+00> : vector<16x128xf32>
    %185 = tpu.matmul %183, %184, %cst_86 {dimension_numbers = #tpu.dot_dimension_numbers<[1], [0], [0], [1], [0, 0, 1, 1], [], []>} : vector<16x8xbf16>, vector<8x128xbf16>, vector<16x128xf32> -> vector<16x128xf32>
    %c0_87 = arith.constant 0 : index
    %c0_88 = arith.constant 0 : index
    %186 = vector.load %arg17[%c0_87, %c0_88] : memref<16x1xf32, #tpu.memory_space<vmem>>, vector<16x1xf32>
    %187 = vector.broadcast %186 : vector<16x1xf32> to vector<16x128xf32>
    %188 = arith.addf %185, %187 : vector<16x128xf32>
    %189 = arith.addf %182, %188 : vector<16x128xf32>
    %c0_89 = arith.constant 0 : index
    %c0_90 = arith.constant 0 : index
    %c0_91 = arith.constant 0 : index
    %190 = vector.load %arg18[%c0_89, %c0_90, %c0_91] : memref<1x16x128xf32, #tpu.memory_space<vmem>>, vector<1x16x128xf32>
    %191 = vector.shape_cast %190 : vector<1x16x128xf32> to vector<16x128xf32>
    %192 = vector.shape_cast %189 : vector<16x128xf32> to vector<1x16x128xf32>
    tpu.vector_store %arg18[%c0_89, %c0_90, %c0_91], %192 {strides = array<i32>} : memref<1x16x128xf32, #tpu.memory_space<vmem>>, vector<1x16x128xf32>,
    return
  }
  func.func @transform_0(%arg0: i32) -> (i32, i32, i32) {
    %c0_i32 = arith.constant 0 : i32
    %c0_i32_0 = arith.constant 0 : i32
    %c0_i32_1 = arith.constant 0 : i32
    return %arg0, %c0_i32, %c0_i32_0 : i32, i32, i32
  }
  func.func @transform_1(%arg0: i32) -> (i32, i32) {
    %c0_i32 = arith.constant 0 : i32
    %c0_i32_0 = arith.constant 0 : i32
    %c0_i32_1 = arith.constant 0 : i32
    return %c0_i32, %c0_i32_0 : i32, i32
  }
  func.func @transform_2(%arg0: i32) -> (i32, i32) {
    %c0_i32 = arith.constant 0 : i32
    %c0_i32_0 = arith.constant 0 : i32
    %c0_i32_1 = arith.constant 0 : i32
    return %c0_i32, %c0_i32_0 : i32, i32
  }
  func.func @transform_3(%arg0: i32) -> (i32, i32) {
    %c0_i32 = arith.constant 0 : i32
    %c0_i32_0 = arith.constant 0 : i32
    %c0_i32_1 = arith.constant 0 : i32
    return %c0_i32, %c0_i32_0 : i32, i32
  }
  func.func @transform_4(%arg0: i32) -> (i32, i32) {
    %c0_i32 = arith.constant 0 : i32
    %c0_i32_0 = arith.constant 0 : i32
    %c0_i32_1 = arith.constant 0 : i32
    return %c0_i32, %c0_i32_0 : i32, i32
  }
  func.func @transform_5(%arg0: i32) -> (i32, i32) {
    %c0_i32 = arith.constant 0 : i32
    %c0_i32_0 = arith.constant 0 : i32
    %c0_i32_1 = arith.constant 0 : i32
    return %c0_i32, %c0_i32_0 : i32, i32
  }
  func.func @transform_6(%arg0: i32) -> (i32, i32) {
    %c0_i32 = arith.constant 0 : i32
    %c0_i32_0 = arith.constant 0 : i32
    %c0_i32_1 = arith.constant 0 : i32
    return %c0_i32, %c0_i32_0 : i32, i32
  }
  func.func @transform_7(%arg0: i32) -> (i32, i32) {
    %c0_i32 = arith.constant 0 : i32
    %c0_i32_0 = arith.constant 0 : i32
    %c0_i32_1 = arith.constant 0 : i32
    return %c0_i32, %c0_i32_0 : i32, i32
  }
  func.func @transform_8(%arg0: i32) -> (i32, i32) {
    %c0_i32 = arith.constant 0 : i32
    %c0_i32_0 = arith.constant 0 : i32
    %c0_i32_1 = arith.constant 0 : i32
    return %c0_i32, %c0_i32_0 : i32, i32
  }
  func.func @transform_9(%arg0: i32) -> (i32, i32) {
    %c0_i32 = arith.constant 0 : i32
    %c0_i32_0 = arith.constant 0 : i32
    %c0_i32_1 = arith.constant 0 : i32
    return %c0_i32, %c0_i32_0 : i32, i32
  }
  func.func @transform_10(%arg0: i32) -> (i32, i32) {
    %c0_i32 = arith.constant 0 : i32
    %c0_i32_0 = arith.constant 0 : i32
    %c0_i32_1 = arith.constant 0 : i32
    return %c0_i32, %c0_i32_0 : i32, i32
  }
  func.func @transform_11(%arg0: i32) -> (i32, i32) {
    %c0_i32 = arith.constant 0 : i32
    %c0_i32_0 = arith.constant 0 : i32
    %c0_i32_1 = arith.constant 0 : i32
    return %c0_i32, %c0_i32_0 : i32, i32
  }
  func.func @transform_12(%arg0: i32) -> (i32, i32) {
    %c0_i32 = arith.constant 0 : i32
    %c0_i32_0 = arith.constant 0 : i32
    %c0_i32_1 = arith.constant 0 : i32
    return %c0_i32, %c0_i32_0 : i32, i32
  }
  func.func @transform_13(%arg0: i32) -> (i32, i32) {
    %c0_i32 = arith.constant 0 : i32
    %c0_i32_0 = arith.constant 0 : i32
    %c0_i32_1 = arith.constant 0 : i32
    return %c0_i32, %c0_i32_0 : i32, i32
  }
  func.func @transform_14(%arg0: i32) -> (i32, i32) {
    %c0_i32 = arith.constant 0 : i32
    %c0_i32_0 = arith.constant 0 : i32
    %c0_i32_1 = arith.constant 0 : i32
    return %c0_i32, %c0_i32_0 : i32, i32
  }
  func.func @transform_15(%arg0: i32) -> (i32, i32) {
    %c0_i32 = arith.constant 0 : i32
    %c0_i32_0 = arith.constant 0 : i32
    %c0_i32_1 = arith.constant 0 : i32
    return %c0_i32, %c0_i32_0 : i32, i32
  }
  func.func @transform_16(%arg0: i32) -> (i32, i32) {
    %c0_i32 = arith.constant 0 : i32
    %c0_i32_0 = arith.constant 0 : i32
    %c0_i32_1 = arith.constant 0 : i32
    return %c0_i32, %c0_i32_0 : i32, i32
  }
  func.func @transform_17(%arg0: i32) -> (i32, i32, i32) {
    %c0_i32 = arith.constant 0 : i32
    %c0_i32_0 = arith.constant 0 : i32
    %c0_i32_1 = arith.constant 0 : i32
    return %arg0, %c0_i32, %c0_i32_0 : i32, i32, i32
  }
}

</mosaic_0001>

<bundles_post_ra>
// kernel: tpu_custom_call.1
= control target key start
LH: loop header
LB: loop body
LE: loop exit
PB: predicated region body
PF: predicated region fallthrough
CT: control target
= control target key end

     0   :  { %s1795_s0 = inlined_call_operand.vmem [shape: f32[2,4,128], index: 0, kind: input, shape index: {}]   ;;  %s1796_s1 = inlined_call_operand.vmem [shape: bf16[8,12], index: 1, kind: input, shape index: {}]   ;;  %s1797_s2 = inlined_call_operand.vmem [shape: f32[8,1], index: 2, kind: input, shape index: {}]   ;;  %s1798_s3 = inlined_call_operand.vmem [shape: bf16[8,24], index: 3, kind: input, shape index: {}]   ;;  %s1799_s4 = inlined_call_operand.vmem [shape: f32[8,1], index: 4, kind: input, shape index: {}]   ;;  %s1800_s5 = inlined_call_operand.vmem [shape: bf16[8,4], index: 5, kind: input, shape index: {}]   ;;  %s1801_s6 = inlined_call_operand.vmem [shape: f32[8,1], index: 6, kind: input, shape index: {}]   ;;  %s1802_s7 = inlined_call_operand.vmem [shape: bf16[8,24], index: 7, kind: input, shape index: {}]   ;;  %s1803_s8 = inlined_call_operand.vmem [shape: f32[8,1], index: 8, kind: input, shape index: {}]   ;;  %s1804_s9 = inlined_call_operand.vmem [shape: bf16[8,24], index: 9, kind: input, shape index: {}]   ;;  %s1805_s10 = inlined_call_operand.vmem [shape: f32[8,1], index: 10, kind: input, shape index: {}]   ;;  %s1806_s11 = inlined_call_operand.vmem [shape: bf16[16,24], index: 11, kind: input, shape index: {}]   ;;  %s1807_s12 = inlined_call_operand.vmem [shape: f32[16,1], index: 12, kind: input, shape index: {}]   ;;  %s1808_s13 = inlined_call_operand.vmem [shape: bf16[16,48], index: 13, kind: input, shape index: {}]   ;;  %s1809_s14 = inlined_call_operand.vmem [shape: f32[16,1], index: 14, kind: input, shape index: {}]   ;;  %s1810_s15 = inlined_call_operand.vmem [shape: bf16[16,8], index: 15, kind: input, shape index: {}]   ;;  %s1811_s16 = inlined_call_operand.vmem [shape: f32[16,1], index: 16, kind: input, shape index: {}]   ;;  %s1812_s17 = inlined_call_operand.hbm [shape: f32[2,16,128], index: 17, kind: output, shape index: {}]  }
   0x1   :  { %1817 = sst [smem:[#allocation8_spill]] %s1795_s0 }
   0x2   :  { %1818 = sst [smem:[#allocation9_spill]] %s1796_s1 }
   0x3   :  { %1819 = sst [smem:[#allocation10_spill]] %s1797_s2 }
   0x4   :  { %1820 = sst [smem:[#allocation11_spill]] %s1798_s3 }
   0x5   :  { %22 = vsyncpa [#allocation3], 0 }
   0x6   :  { %24 = vsyncpa [#allocation3 + $0x1], 0  ;;  %s1548_s24 = smov 0   ;;  %s1550_s25 = smov 0  }
   0x7   :  { %s1552_s26 = smov 0   ;;  %s1554_s27 = smov 0  }
   0x8 LB: > { %1821 = sst [smem:[#allocation5_spill]] %s1443_s26  ;;  %s1569_s28 = sadd.s32 4294967295, %s1447_s27   ;;  %s1447_s27 = sphi %s1554_s27, %s1833_s27   ;;  %s1443_s26 = sphi %s1552_s26, %s1835_s26   ;;  %s1439_s25 = sphi %s1550_s25, %s1837_s25   ;;  %s1435_s24 = sphi %s1548_s24, %s1836_s24  }
   0x9   : > { %s1202_s29 = sadd.s32 4294967294, %s1447_s27   ;;  %s1573_s0 = sadd.s32 1, %s1447_s27  }
   0xa   : > { %1822 = sst [smem:[#allocation6_spill]] %s1573_s0  ;;  %s399_s30 = sadd.s32 1, %s1443_s26 }
   0xb   : > { %s396_s18 = ssub.s32 %s1447_s27, %s1573_s0  ;;  %p409_p0 = scmp.ne.s32.totalorder %s1443_s26, %s1439_s25 }
   0xc   : > { %p397_p1 = scmp.eq.s32.totalorder %s396_s18, 0  ;;  %p410_p2 = scmp.eq.s32.totalorder %s1569_s28, 1 }
   0xd   : > { %p415_p3 = scmp.ne.s32.totalorder %s1439_s25, %s1435_s24  ;;  %p416_p4 = scmp.eq.s32.totalorder %s1202_s29, 1 }
   0xe   : > { %s1584_s19 = scalar_select %p397_p1, %s1443_s26, %s399_s30  }
   0xf   : > { %p1586_p5 = por %p410_p2, %p409_p0  ;;  %p1590_p6 = por %p416_p4, %p415_p3 }
  0x10   : > { %1823 = sst [smem:[#allocation7_spill]] %s1584_s19  ;;  %p1205_p7 = scmp.ge.s32.totalorder %s1447_s27, 1 }
  0x11   : > { %p489_p8 = scmp.lt.s32.totalorder %s1447_s27, 3 }
  0x13   : > { %p490_p9 = pnand %p1205_p7, %p489_p8 }
  0x14   : > { %p540_p10 = scmp.lt.s32.totalorder (!%p490_p9), %s1569_s28, 1  ;;  %s1826_s30 = sld [smem:[#allocation8_spill]] (!%p490_p9) }
  0x15   : > { %493 = sbr.rel (%p490_p9) target bundleno = 1986 (0x7c2), region = 88  ;;  %s1827_s2 = sld [smem:[#allocation10_spill]] (!%p490_p9) }
  0x16   : > { %s1451_s0 = smov (!%p490_p9), 1   ;;  %s1829_s3 = sld [smem:[#allocation11_spill]] (!%p490_p9) }
  0x17   : > { %s1816_s23 = smov (!%p490_p9), 8   ;;  %s537_s19 = sand.u32 (!%p490_p9), 1, %s1439_s25  }
  0x1a   : > { %v1449_v0 = vmov 0.0   ;;  %s541_s21 = scalar_select %p540_p10, %s1569_s28, 1  ;;  %vm1450_vm0 = vmmov 0   ;;  %v1452_v3 = vmov 0   ;;  %v545_v4 = vlaneseq  ;;  %v701_v17 = vld [vmem:[%s1800_s5] sm:$0xf] }
  0x1b   : > { %1265 = vmatprep.subr.bf16.mxu0 %v1449_v0  ;;  %1271 = vmatprep.subr.bf16.mxu1 %v1449_v0  ;;  %v579_v2 = vld [vmem:[%s1827_s2] sm:$0xff]  ;;  %vm575_vm3 = vcmask 1043456   ;;  %vm589_vm4 = vcmask 1045504   ;;  %vm585_vm5 = vcmask 97280   ;;  %vm713_vm6 = vcmask 1041408  }
  0x1c   : > { %s1207_s22 = sshll.u32 %s541_s21, 2  ;;  %1267 = vmatprep.mubr.msk.bf16.mxu0 %vm1450_vm0, %v1449_v0  ;;  %1275 = vmatprep.mubr.msk.bf16.mxu1 %vm1450_vm0, %v1449_v0  ;;  %s1453_s21 = smov 2   ;;  %v1612_v5 = vand.u32 127, %v545_v4  ;;  %vm709_vm7 = vcmask 31744   ;;  %v645_v27 = vld [vmem:[%s1799_s4] sm:$0xff]  ;;  %vm651_vm10 = vcmask 195584  }
  0x1d   : > { %s543_s18 = scalar_lea.vmem %s1826_s30, %s1207_s22  ;;  %1372 = vset.pattern.permute.xlu1 %v1452_v3  ;;  %1373 = vset.pattern.permute.xlu0 %v1452_v3  ;;  %s1828_s22 = sld [smem:[#allocation9_spill]]  ;;  %v703_v29 = vld [vmem:[%s1801_s6] sm:$0xff] }
  0x1e   : > { %v559_v1 = vld [vmem:[%s543_s18] sm:$0xf]  ;;  %582 = vperm.xlu1 %1372, %v579_v2   ;;  %vm568_vm1 = vcmp.ge.s32.totalorder %v1612_v5, 1  ;;  %vm562_vm2 = vcmp.ge.s32.totalorder %v1612_v5, 2  ;;  %s1454_s30 = smov 4   ;;  %vm760_vm12 = vcmp.ge.s32.totalorder %v1612_v5, 4 }
  0x1f   : > { %566 = vrot.lane.b32.xlu0 %v559_v1, %s1451_s0  ;;  %v702_v15 = vpack.c.bf16 %v559_v1, %v559_v1  ;;  %v770_v30 = vld [vmem:[%s1803_s8] sm:$0xff]  ;;  %vm1209_vm9 = vmpackc.low %vm568_vm1, %vm562_vm2 }
  0x20   : > { %v644_v34 = vld [vmem:[%s1829_s3] sm:$0xf]  ;;  %vm1666_vm13 = vmpackc.low %vm562_vm2, %vm760_vm12 }
  0x21   : > { %v715_v16 = vsel %vm713_vm6, %v702_v15, 0  ;;  %v769_v56 = vld [vmem:[%s1802_s7] sm:$0xf] }
  0x22   : > { %v834_v3 = vld [vmem:[%s1805_s10] sm:$0xff] }
  0x23   : > { %560 = vrot.lane.b32.xlu0 %v559_v1, %s1453_s21  ;;  %v578_v14 = vld [vmem:[%s1828_s22] sm:$0xf] }
  0x91   : > { %v567_v6 = vpop.permute.xlu0 %566 }
  0x92   : > { %v571_v7 = vsel %vm568_vm1, %v567_v6, 0.0  ;;  %vm892_vm1 = vcmp.ge.s32.totalorder %v1612_v5, 8 }
  0x93   : > { %v573_v8 = vrot.slane %v571_v7, 4  ;;  %vm1231_vm6 = vmpackc.low %vm892_vm1, %vm892_vm1 }
  0x95   : > { %v561_v9 = vpop.permute.xlu0 %560 }
  0x96   : > { %v565_v10 = vsel %vm562_vm2, %v561_v9, 0.0  ;;  %v833_v9 = vld [vmem:[%s1804_s9] sm:$0xf]  ;;  %vm1223_vm2 = vmpackc.low %vm760_vm12, %vm892_vm1 }
  0x97   : > { %v576_v11 = vsel %vm575_vm3, %v565_v10, %v573_v8 }
  0x98   : > { %v577_v12 = vpack.c.bf16 %v559_v1, %v576_v11 }
  0x99   : > { %v583_v18 = vpop.permute.xlu1 %582 }
  0x9a   : > { %v591_v13 = vsel %vm589_vm4, %v577_v12, 0 }
  0x9b   : > { %1266 = vmatpush3.bf16.msra.mxu0 %v591_v13 }
  0x9c   : > { %1279 = vmatprep.subr.bf16.mxu0 %v1449_v0 }
  0x9e   : > { %1268 = vmatmul.mubr.msk.bf16.vlgmr.msra.gmra.mxu0 %vm585_vm5, %v578_v14 }
  0x9f   : > { %1281 = vmatprep.mubr.msk.bf16.mxu0 %vm1450_vm0, %v1449_v0  ;;  %1280 = vmatpush3.bf16.msra.mxu0 %v715_v16 }
  0xa0   : > { %1293 = vmatprep.subr.bf16.mxu0 %v1449_v0 }
  0xa6   : > { %1282 = vmatmul.mubr.msk.bf16.vlgmr.msra.gmra.mxu0 %vm709_vm7, %v701_v17  ;;  %vm1007_vm7 = vcmask 392192  }
  0xa7   : > { %1297 = vmatprep.mubr.msk.bf16.mxu0 %vm1450_vm0, %v1449_v0 }
 0x15e   : > { %v627_v19 = vpop.f32.mrf.mxu0 }
 0x15f   : > { %v628_v20 = vadd.f32 %v627_v19, %v583_v18 }
 0x160   : > { %v1269_v21 = vpop.f32.mrf.mxu0 }
 0x161   : > { %v634_v22 = vmul.f32 0.01, %v628_v20  ;;  %vm633_vm8 = vcmp.gt.f32.partialorder %v628_v20, 0.0  ;;  %v903_v21 = vld [vmem:[%s1807_s12] sm:$0xff] }
 0x162   : > { %v630_v23 = vpop.f32.mrf.mxu0 }
 0x163   : > { %v635_v24 = vsel %vm633_vm8, %v628_v20, %v634_v22  ;;  %v904_v20 = vld [vmem:[%s1807_s12 + $0x8] sm:$0xff] }
 0x164   : > { %639 = vrot.lane.b32.xlu0 %v635_v24, %s1451_s0  ;;  %636 = vrot.lane.b32.xlu1 %v635_v24, %s1453_s21  ;;  %v1270_v25 = vpop.f32.mrf.mxu0  ;;  %v643_v26 = vpack.c.bf16 %v635_v24, %v635_v24  ;;  %s1206_s0 = sshll.u32 %s537_s19, 4 }
 0x165   : > { %s539_s22 = scalar_lea.vmem [#allocation2], %s1206_s0  ;;  %s1456_s0 = smov [#allocation2]  }
 0x166   : > { %v656_v28 = vsel %vm575_vm3, %v643_v26, 0  ;;  %v751_v35 = vpop.f32.mrf.mxu0  ;;  %v1384_v26 = vld [vmem:[%s1806_s11] sm:$0xff]   ;;  %s1391_s2 = sshll.u32 %s1456_s0, 4  ;;  %s1392_s2 = int_to_ptr.vmem [resolvable:$false] %s1391_s2 }
 0x167   : > { %1272 = vmatpush3.bf16.msra.mxu1 %v656_v28  ;;  %s1393_s29 = scalar_lea.vmem %s1392_s2, 512 }
 0x168   : > { %648 = vperm.xlu1 %1372, %v645_v27   ;;  %1273 = vmatprep.subr.bf16.mxu1 %v1449_v0  ;;  %v1283_v36 = vpop.f32.mrf.mxu0  ;;  %v1385_v27 = vld [vmem:[%s1810_s15] sm:$0xff]  }
 0x169   : > { %706 = vperm.xlu0 %1373, %v703_v29  }
 0x16a   : > { %v754_v37 = vpop.f32.mrf.mxu0 }
 0x16c   : > { %v1284_v38 = vpop.f32.mrf.mxu0 }
 0x16d   : > { %773 = vperm.xlu0 %1373, %v770_v30  }
 0x1d6   : > { %v640_v31 = vpop.permute.xlu0 %639  ;;  %v637_v32 = vpop.permute.xlu1 %636 }
 0x1d7   : > { %v1210_v33 = vpack.c.bf16 %v640_v31, %v637_v32 }
 0x1d9   : > { %1274 = vmatpush3.bf16.msk.msra.mxu1 %vm1209_vm9, %v1210_v33 }
 0x1da   : > { %1285 = vmatprep.subr.bf16.mxu1 %v1449_v0 }
 0x1dc   : > { %1276 = vmatmul.mubr.msk.bf16.vlgmr.msra.gmra.mxu1 %vm651_vm10, %v644_v34 }
 0x1dd   : > { %1289 = vmatprep.mubr.msk.bf16.mxu1 %vm1450_vm0, %v1449_v0 }
 0x1e3   : > { %v649_v39 = vpop.permute.xlu1 %648 }
 0x1e4   : > { %v707_v41 = vpop.permute.xlu0 %706 }
 0x1e5   : > { %v752_v43 = vadd.f32 %v751_v35, %v707_v41 }
 0x1e8   : > { %v774_v57 = vpop.permute.xlu0 %773 }
 0x29c   : > { %v692_v40 = vpop.f32.mrf.mxu1 }
 0x29d   : > { %v693_v42 = vadd.f32 %v692_v40, %v649_v39 }
 0x29e   : > { %v1277_v44 = vpop.f32.mrf.mxu1 }
 0x29f   : > { %vm698_vm11 = vcmp.gt.f32.partialorder %v693_v42, 0.0  ;;  %v699_v45 = vmul.f32 0.01, %v693_v42  ;;  %v990_v44 = vld [vmem:[%s1809_s14] sm:$0xff] }
 0x2a0   : > { %v695_v46 = vpop.f32.mrf.mxu1 }
 0x2a1   : > { %v700_v47 = vsel %vm698_vm11, %v693_v42, %v699_v45 }
 0x2a2   : > { %v757_v48 = vadd.f32 %v752_v43, %v700_v47  ;;  %v1278_v49 = vpop.f32.mrf.mxu1  ;;  %v991_v43 = vld [vmem:[%s1809_s14 + $0x8] sm:$0xff] }
 0x2a3   : > { %v1061_v47 = vld [vmem:[%s1811_s16 + $0x8] sm:$0xff] }
 0x2a4   : > { %758 = vrot.lane.b32.xlu1 %v757_v48, %s1454_s30  ;;  %v768_v50 = vpack.c.bf16 %v757_v48, %v757_v48 }
 0x2a6   : > { %v780_v51 = vsel %vm575_vm3, %v768_v50, 0 }
 0x2a7   : > { %1286 = vmatpush3.bf16.msra.mxu1 %v780_v51 }
 0x2a8   : > { %764 = vrot.lane.b32.xlu1 %v757_v48, %s1453_s21  ;;  %1287 = vmatprep.subr.bf16.mxu1 %v1449_v0 }
 0x316   : > { %v759_v52 = vpop.permute.xlu1 %758 }
 0x31a   : > { %v765_v53 = vpop.permute.xlu1 %764 }
 0x31b   : > { %v1215_v55 = vpack.c.bf16 %v765_v53, %v759_v52 }
 0x31d   : > { %1288 = vmatpush3.bf16.msk.msra.mxu1 %vm1666_vm13, %v1215_v55 }
 0x31e   : > { %1301 = vmatprep.subr.bf16.mxu1 %v1449_v0 }
 0x320   : > { %1290 = vmatmul.mubr.msk.bf16.vlgmr.msra.gmra.mxu1 %vm651_vm10, %v769_v56 }
 0x321   : > { %1305 = vmatprep.mubr.msk.bf16.mxu1 %vm1450_vm0, %v1449_v0 }
 0x3e0   : > { %v816_v58 = vpop.f32.mrf.mxu1 }
 0x3e1   : > { %v817_v59 = vadd.f32 %v816_v58, %v774_v57  ;;  %v1386_v58 = vld [vmem:[%s1808_s13] sm:$0xff]  }
 0x3e2   : > { %v1291_v60 = vpop.f32.mrf.mxu1 }
 0x3e3   : > { %v823_v61 = vmul.f32 0.01, %v817_v59  ;;  %vm822_vm14 = vcmp.gt.f32.partialorder %v817_v59, 0.0 }
 0x3e4   : > { %v819_v62 = vpop.f32.mrf.mxu1 }
 0x3e5   : > { %v824_v63 = vsel %vm822_vm14, %v817_v59, %v823_v61 }
 0x3e6   : > { %828 = vrot.lane.b32.xlu0 %v824_v63, %s1453_s21  ;;  %v832_v1 = vpack.c.bf16 %v824_v63, %v824_v63  ;;  %825 = vrot.lane.b32.xlu1 %v824_v63, %s1454_s30  ;;  %v1292_v2 = vpop.f32.mrf.mxu1  ;;  %s1242_s21 = sshll.u32 %s1569_s28, 8  ;;  %s1754_s28 = scalar_lea.sflag [#allocation3], %s537_s19 }
 0x3e7   : > { %s1750_s26 = scalar_lea.hbm %s1812_s17, %s1242_s21 }
 0x3e8   : > { %v844_v4 = vsel %vm575_vm3, %v832_v1, 0 }
 0x3e9   : > { %1294 = vmatpush3.bf16.msra.mxu0 %v844_v4 }
 0x3ea   : > { %837 = vperm.xlu1 %1372, %v834_v3   ;;  %1295 = vmatprep.subr.bf16.mxu0 %v1449_v0 }
 0x458   : > { %v829_v6 = vpop.permute.xlu0 %828  ;;  %v826_v7 = vpop.permute.xlu1 %825 }
 0x459   : > { %v1219_v8 = vpack.c.bf16 %v829_v6, %v826_v7 }
 0x45b   : > { %1296 = vmatpush3.bf16.msk.msra.mxu0 %vm1666_vm13, %v1219_v8 }
 0x45c   : > { %1309 = vmatprep.subr.bf16.mxu0 %v1449_v0 }
 0x45e   : > { %1298 = vmatmul.mubr.msk.bf16.vlgmr.msra.gmra.mxu0 %vm651_vm10, %v833_v9 }
 0x45f   : > { %1315 = vmatprep.mubr.msk.bf16.mxu0 %vm1450_vm0, %v1449_v0 }
 0x465   : > { %v838_v10 = vpop.permute.xlu1 %837 }
 0x51e   : > { %v880_v11 = vpop.f32.mrf.mxu0 }
 0x51f   : > { %v881_v12 = vadd.f32 %v880_v11, %v838_v10 }
 0x520   : > { %v1299_v13 = vpop.f32.mrf.mxu0 }
 0x521   : > { %vm886_vm15 = vcmp.gt.f32.partialorder %v881_v12, 0.0  ;;  %v887_v14 = vmul.f32 0.01, %v881_v12 }
 0x522   : > { %v883_v15 = vpop.f32.mrf.mxu0 }
 0x523   : > { %v888_v16 = vsel %vm886_vm15, %v881_v12, %v887_v14 }
 0x524   : > { %v1300_v17 = vpop.f32.mrf.mxu0  ;;  %v889_v18 = vadd.f32 %v888_v16, %v757_v48  ;;  %v1060_v48 = vld [vmem:[%s1811_s16] sm:$0xff] }
 0x526   : > { %896 = vrot.lane.b32.xlu1 %v889_v18, %s1454_s30  ;;  %890 = vrot.lane.b32.xlu0 %v889_v18, %s1816_s23  ;;  %v900_v19 = vpack.c.bf16 %v889_v18, %v889_v18 }
 0x528   : > { %v924_v22 = vsel %vm575_vm3, %v900_v19, 0  ;;  %vm1077_vm3 = vcmask 64512  }
 0x529   : > { %1302 = vmatpush3.bf16.msra.mxu1 %v924_v22 }
 0x52a   : > { %912 = vperm.xlu1 %1372, %v904_v20   ;;  %907 = vperm.xlu0 %1373, %v903_v21  }
 0x52b   : > { %1303 = vmatprep.subr.bf16.mxu1 %v1449_v0 }
 0x598   : > { %v897_v23 = vpop.permute.xlu1 %896  ;;  %v891_v24 = vpop.permute.xlu0 %890 }
 0x599   : > { %v1224_v25 = vpack.c.bf16 %v897_v23, %v891_v24 }
 0x59b   : > { %1304 = vmatpush3.bf16.msk.msra.mxu1 %vm1223_vm2, %v1224_v25 }
 0x59c   : > { %1319 = vmatprep.subr.bf16.mxu1 %v1449_v0 }
 0x59e   : > { %1306 = vmatmul.mubr.msk.bf16.vlgmr.msra.gmra.mxu1 %vm651_vm10, %v1384_v26 }
 0x59f   : > { %1320 = vmatpush3.bf16.msra.mxu1 %v924_v22  ;;  %1321 = vmatprep.mubr.msk.bf16.mxu1 %vm1450_vm0, %v1449_v0  ;;  %vm1228_vm0 = vmpackc.low %vm760_vm12, %vm760_vm12 }
 0x5a5   : > { %v908_v28 = vpop.permute.xlu0 %907  ;;  %v913_v32 = vpop.permute.xlu1 %912 }
 0x5a6   : > { %1322 = vmatmul.mubr.msk.bf16.vlgmr.msra.gmra.mxu1 %vm1077_vm3, %v1385_v27 }
 0x65e   : > { %v960_v29 = vpop.f32.mrf.mxu1 }
 0x65f   : > { %v961_v30 = vadd.f32 %v960_v29, %v908_v28 }
 0x660   : > { %v1307_v31 = vpop.f32.mrf.mxu1 }
 0x661   : > { %v969_v34 = vmul.f32 0.01, %v961_v30  ;;  %vm967_vm4 = vcmp.gt.f32.partialorder %v961_v30, 0.0 }
 0x662   : > { %v963_v33 = vpop.f32.mrf.mxu1 }
 0x663   : > { %v964_v35 = vadd.f32 %v963_v33, %v913_v32  ;;  %v971_v38 = vsel %vm967_vm4, %v961_v30, %v969_v34 }
 0x664   : > { %v1308_v36 = vpop.f32.mrf.mxu1 }
 0x665   : > { %vm968_vm5 = vcmp.gt.f32.partialorder %v964_v35, 0.0  ;;  %v970_v37 = vmul.f32 0.01, %v964_v35 }
 0x666   : > { %v1115_v42 = vpop.f32.mrf.mxu1 }
 0x667   : > { %v972_v39 = vsel %vm968_vm5, %v964_v35, %v970_v37 }
 0x668   : > { %v987_v40 = vpack.c.bf16 %v972_v39, %v971_v38  ;;  %v1379_v41 = vpack.i.bf16 %v972_v39, %v971_v38  ;;  %v1323_v45 = vpop.f32.mrf.mxu1 }
 0x66a   : > { %1380 = vrot.lane.b32.xlu1 %v1379_v41, %s1816_s23  ;;  %1375 = vrot.lane.b32.xlu0 %v1379_v41, %s1454_s30  ;;  %v1118_v46 = vpop.f32.mrf.mxu1  ;;  %s1140_s30 = sshll.u32 %s539_s22, 4  ;;  %s1752_s30 = int_to_ptr.vmem [resolvable:$true] %s1140_s30 }
 0x66b   : > { %1310 = vmatpush3.bf16.msra.mxu0 %v987_v40  ;;  %s1387_s23 = scalar_lea.vmem %s1752_s30, 256  ;;  %p1394_p0 = scmp.lt.s32.totalorder %s1752_s30, %s1392_s2 }
 0x66c   : > { %1311 = vmatprep.subr.bf16.mxu0 %v1449_v0  ;;  %v1324_v49 = vpop.f32.mrf.mxu1  ;;  %p1388_p11 = scmp.ne.s32.totalorder %s1752_s30, %s1387_s23  ;;  %p1395_p1 = scmp.lt.s32.totalorder %s1393_s29, %s1387_s23 }
 0x66e   : > { %999 = vperm.xlu1 %1372, %v991_v43   ;;  %994 = vperm.xlu0 %1373, %v990_v44   ;;  %p1389_p12 = pnand %p1388_p11, %p1586_p5  ;;  %p1396_p2 = por %p1395_p1, %p1394_p0 }
 0x670   : > { %p1390_p13 = pneg %p1389_p12 }
 0x672   : > { %1069 = vperm.xlu1 %1372, %v1061_v47   ;;  %1064 = vperm.xlu0 %1373, %v1060_v48   ;;  %p1397_p3 = pnand %p1396_p2, %p1390_p13 }
 0x6dc   : > { %v1381_v50 = vpop.permute.xlu1 %1380  ;;  %v1376_v51 = vpop.permute.xlu0 %1375 }
 0x6dd   : > { %v1378_v52 = vunpack.i.h.bf16 %v1376_v51  ;;  %v1377_v53 = vunpack.i.l.bf16 %v1376_v51  ;;  %v1383_v54 = vunpack.i.h.bf16 %v1381_v50  ;;  %v1382_v55 = vunpack.i.l.bf16 %v1381_v50 }
 0x6df   : > { %v1229_v56 = vpack.c.bf16 %v1378_v52, %v1377_v53  ;;  %v1232_v57 = vpack.c.bf16 %v1383_v54, %v1382_v55 }
 0x6e1   : > { %1312 = vmatpush3.bf16.msk.msra.mxu0 %vm1228_vm0, %v1229_v56 }
 0x6e2   : > { %1313 = vmatprep.subr.bf16.mxu0 %v1449_v0 }
 0x6e5   : > { %1314 = vmatpush3.bf16.msk.msra.mxu0 %vm1231_vm6, %v1232_v57 }
 0x6e8   : > { %1316 = vmatmul.mubr.msk.bf16.vlgmr.msra.gmra.mxu0 %vm1007_vm7, %v1386_v58 }
 0x6e9   : > { %v995_v59 = vpop.permute.xlu0 %994  ;;  %v1000_v60 = vpop.permute.xlu1 %999 }
 0x6ed   : > { %v1065_v62 = vpop.permute.xlu0 %1064  ;;  %v1070_v3 = vpop.permute.xlu1 %1069 }
 0x6ee   : > { %v1116_v1 = vadd.f32 %v1115_v42, %v1065_v62  ;;  %v1119_v10 = vadd.f32 %v1118_v46, %v1070_v3 }
 0x7a8   : > { %v1045_v61 = vpop.f32.mrf.mxu0 }
 0x7a9   : > { %v1046_v63 = vadd.f32 %v1045_v61, %v995_v59 }
 0x7aa   : > { %v1317_v0 = vpop.f32.mrf.mxu0 }
 0x7ab   : > { %vm1052_vm8 = vcmp.gt.f32.partialorder %v1046_v63, 0.0  ;;  %v1054_v5 = vmul.f32 0.01, %v1046_v63 }
 0x7ac   : > { %v1048_v2 = vpop.f32.mrf.mxu0 }
 0x7ad   : > { %v1056_v4 = vsel %vm1052_vm8, %v1046_v63, %v1054_v5  ;;  %v1049_v6 = vadd.f32 %v1048_v2, %v1000_v60 }
 0x7ae   : > { %v1122_v7 = vadd.f32 %v1116_v1, %v1056_v4  ;;  %v1318_v8 = vpop.f32.mrf.mxu0 }
 0x7af   : > { %vm1053_vm9 = vcmp.gt.f32.partialorder %v1049_v6, 0.0  ;;  %v1055_v9 = vmul.f32 0.01, %v1049_v6 }
 0x7b0   : > { %1124 = vst [vmem:[%s539_s22] sm:$0xff] %v1122_v7 }
 0x7b1   : > { %v1057_v11 = vsel %vm1053_vm9, %v1049_v6, %v1055_v9 }
 0x7b2   : > { %v1123_v12 = vadd.f32 %v1119_v10, %v1057_v11 }
 0x7b4   : > { %1125 = vst [vmem:[%s539_s22 + $0x8] sm:$0xff] %v1123_v12 }
 0x7b5   : > { %1400 = shalt.err (!%p1397_p3)
}
 0x7b6   : > { %s1401_s19 = scalar_lea.hbm %s1750_s26, 256  ;;  %s1405_s18 = scalar_lea.hbm %s1812_s17, 512 }
 0x7b7   : > { %p1402_p4 = scmp.ne.s32.totalorder %s1750_s26, %s1401_s19  ;;  %p1406_p9 = scmp.lt.s32.totalorder %s1750_s26, %s1812_s17 }
 0x7b8   : > { %p1407_p10 = scmp.lt.s32.totalorder %s1405_s18, %s1401_s19 }
 0x7b9   : > { %p1403_p7 = pnand %p1402_p4, %p1586_p5 }
 0x7ba   : > { %p1408_p11 = por %p1407_p10, %p1406_p9 }
 0x7bb   : > { %p1404_p8 = pneg %p1403_p7 }
 0x7bd   : > { %p1409_p12 = pnand %p1408_p11, %p1404_p8 }
 0x7bf   : > { %1412 = shalt.err (!%p1409_p12)
}
 0x7c0   : > { %s1457_s2 = smov 128   ;;  %s1832_s23 = smov 8  }
 0x7c1   : > { %1325 = dma.vmem_to_hbm [thread:$0]  (%p1586_p5), %s1752_s30, 256, %s1750_s26, %s1754_s28, %s1457_s2, %s1457_s2, %s1832_s23  }
 0x7c2 PF: > { %p1331_p13 = scmp.ge.s32.totalorder %s1447_s27, 2  ;;  %s1155_s29 = sand.u32 1, %s1435_s24  }
 0x7c3   : > { %s1156_s3 = scalar_lea.sflag [#allocation3], %s1155_s29 }
 0x7c4   : > { %p1328_p0 = pnand %p1331_p13, %p1590_p6 }
 0x7c6   : > { %p1329_p1 = pneg %p1328_p0 }
 0x7c8   : > { %1430 = dma.done.wait (%p1329_p1), %s1156_s3, 256  }
 0x7c9   : > { %1432 = vsyncadd (%p1329_p1), %s1156_s3, 4294967040  ;;  %s1833_s27 = sld [smem:[#allocation6_spill]]  ;;  %s1836_s24 = smov %s1439_s25 }
 0x7ca   : > { %s1834_s1 = sld [smem:[#allocation5_spill]] }
 0x7cb   : > { %s1835_s26 = sld [smem:[#allocation7_spill]] }
 0x7cf   : > { %p27_p2 = scmp.ge.s32.totalorder %s1833_s27, 4  }
 0x7d0   : > { %s1837_s25 = smov %s1834_s1 }
 0x7d1   :  { %29 = sbr.rel (!%p27_p2) target bundleno = 8 (0x8), region = 123 }
 0x7d6   :  { %1161 = vsyncpa [#allocation3], 1 }
 0x7d7   :  { %1163 = vsyncpa [#allocation3 + $0x1], 1 }

</bundles_post_ra>
